<compile_context>
chip_gen: v5e
topology: v5e:2x2
jax: 0.10.0
libtpu: 0.0.40
codegen_flags: <defaults>
</compile_context>

<pallas_src>
import math
import functools

import jax
import jax.numpy as jnp
from jax.experimental import pallas as pl
from jax.experimental.pallas import tpu as pltpu


def _round_up(x, m):
    return ((x + m - 1) // m) * m


# ---------------------------------------------------------------------------
# Generation-aware VMEM budgets.
# ---------------------------------------------------------------------------
def _vmem_capacity_bytes():
    try:
        info = pltpu.get_tpu_info()
        cap = getattr(info, "vmem_capacity_bytes", None)
        if cap:
            return int(cap)
    except Exception:
        pass
    return 64 * 1024 * 1024  # conservative default (v7x-sized)


_VMEM_CAP = _vmem_capacity_bytes()
# Leave headroom for compiler scratch; 96 MiB on 128 MiB parts, 48 MiB on v7x.
_VMEM_LIMIT_BYTES = min((_VMEM_CAP * 3) // 4, 96 * 1024 * 1024)
_FUSED_VMEM_BUDGET = max(_VMEM_LIMIT_BYTES - 8 * 1024 * 1024, 8 * 1024 * 1024)


def _single_buffer_supported():
    if not hasattr(pl, "Buffered"):
        return False
    try:
        pl.BlockSpec((8, 128), lambda i: (0, 0), pipeline_mode=pl.Buffered(1))
        return True
    except TypeError:
        return False


_SINGLE_BUFFER_OK = _single_buffer_supported()


def _spec(block_shape, index_map, *, buffers=None):
    """BlockSpec, optionally with an explicit buffer count (if supported)."""
    if buffers is not None and _SINGLE_BUFFER_OK:
        return pl.BlockSpec(block_shape, index_map,
                            pipeline_mode=pl.Buffered(buffers))
    return pl.BlockSpec(block_shape, index_map)


def _to_bf16(x):
    return x if x.dtype == jnp.bfloat16 else x.astype(jnp.bfloat16)


# ---------------------------------------------------------------------------
# Fused GCN kernel (problems that fit VMEM):
#   out[i_blk] = adj[i_blk, :] @ (x @ W) + bias
# x / W / adj arrive in their original dtype (f32) and are cast to bf16 on the
# VPU inside the kernel; accumulation is f32 on the MXU.  support = x @ W is
# computed ONLY on grid step 0 and kept resident in a VMEM scratch.
# ---------------------------------------------------------------------------
def _fused_gcn_bias_kernel(x_ref, w_ref, adj_ref, bias_ref, o_ref, support_ref):
    @pl.when(pl.program_id(0) == 0)
    def _():
        support_ref[...] = jnp.dot(
            _to_bf16(x_ref[...]), _to_bf16(w_ref[...]),
            preferred_element_type=jnp.float32).astype(jnp.bfloat16)

    out = jnp.dot(_to_bf16(adj_ref[...]), support_ref[...],
                  preferred_element_type=jnp.float32)
    o_ref[...] = (out + bias_ref[...]).astype(o_ref.dtype)


def _fused_gcn_kernel(x_ref, w_ref, adj_ref, o_ref, support_ref):
    @pl.when(pl.program_id(0) == 0)
    def _():
        support_ref[...] = jnp.dot(
            _to_bf16(x_ref[...]), _to_bf16(w_ref[...]),
            preferred_element_type=jnp.float32).astype(jnp.bfloat16)

    out = jnp.dot(_to_bf16(adj_ref[...]), support_ref[...],
                  preferred_element_type=jnp.float32)
    o_ref[...] = out.astype(o_ref.dtype)


def _fused_tm(n_nodes):
    # 128-row output blocks; per-step pipeline overhead (~0.35us) is tiny
    # relative to the adj row-panel DMA at this width.
    return min(128, _round_up(n_nodes, 8))


def _fused_vmem_bytes(n_nodes, f_in, f_out, x_itemsize=4, adj_itemsize=4):
    nk = _round_up(n_nodes, 128)
    fip = _round_up(f_in, 128)
    fop = _round_up(f_out, 128)
    tm = _fused_tm(n_nodes)
    rb = 1 if _SINGLE_BUFFER_OK else 2        # buffering of grid-invariant inputs
    return (rb * nk * fip * x_itemsize        # x (resident, original dtype)
            + rb * fip * fop * 4              # weight (resident, f32)
            + rb * fop * 4                    # bias (f32)
            + 2 * tm * nk * adj_itemsize      # adj row panel (double-buffered)
            + nk * fop * 2                    # support scratch (bf16)
            + 2 * tm * fop * 4)               # output block (f32, double-buffered)


def _use_fused(n_nodes, f_in, f_out):
    return _fused_vmem_bytes(n_nodes, f_in, f_out) <= _FUSED_VMEM_BUDGET


def fused_gcn_forward(x, adj, weight, bias, *, out_dtype=jnp.float32):
    n, f_in = x.shape
    f_in2, f_out = weight.shape
    assert f_in == f_in2
    assert adj.shape == (n, n)

    nk = _round_up(n, 128)            # adj cols == x rows == support rows
    fip = _round_up(f_in, 128)
    fop = _round_up(f_out, 128)
    tm = _fused_tm(n)
    mp = _round_up(n, tm)             # adj rows == output rows

    # No wrapper-side bf16 cast pass; padding is a no-op for aligned shapes.
    xp = jnp.pad(x, ((0, nk - n), (0, fip - f_in)))
    wp = jnp.pad(weight, ((0, fip - f_in), (0, fop - f_out)))
    adjp = jnp.pad(adj, ((0, mp - n), (0, nk - n)))

    in_specs = [
        _spec((nk, fip), lambda i: (0, 0), buffers=1),    # x: resident
        _spec((fip, fop), lambda i: (0, 0), buffers=1),   # W: resident
        pl.BlockSpec((tm, nk), lambda i: (i, 0)),         # adj: row panel / step
    ]
    inputs = [xp, wp, adjp]
    if bias is not None:
        biasp = jnp.pad(bias.astype(jnp.float32).reshape(1, -1),
                        ((0, 0), (0, fop - f_out)))
        in_specs.append(_spec((1, fop), lambda i: (0, 0), buffers=1))
        inputs.append(biasp)
        kernel = _fused_gcn_bias_kernel
    else:
        kernel = _fused_gcn_kernel

    flops = 2 * n * f_in * f_out + 2 * n * n * f_out   # X@W counted once
    bytes_accessed = (xp.size * xp.dtype.itemsize + wp.size * wp.dtype.itemsize
                      + adjp.size * adjp.dtype.itemsize + mp * fop * 4)

    out = pl.pallas_call(
        kernel,
        out_shape=jax.ShapeDtypeStruct((mp, fop), out_dtype),
        grid_spec=pltpu.PrefetchScalarGridSpec(
            num_scalar_prefetch=0,
            grid=(mp // tm,),
            in_specs=in_specs,
            out_specs=pl.BlockSpec((tm, fop), lambda i: (i, 0)),
            scratch_shapes=[pltpu.VMEM((nk, fop), jnp.bfloat16)],
        ),
        # "arbitrary": step 0 fills the support scratch which later steps
        # reuse, so this axis must run in order on one core.
        # TODO(synk): on v7x (2 TCs) this idles one core for the fused path;
        # hoisting X@W into a tiny separate pallas_call would restore it.
        compiler_params=pltpu.CompilerParams(
            dimension_semantics=("arbitrary",),
            vmem_limit_bytes=_VMEM_LIMIT_BYTES,
        ),
        cost_estimate=pl.CostEstimate(
            flops=flops, transcendentals=0, bytes_accessed=bytes_accessed),
    )(*inputs)
    return out[:n, :f_out]


# ---------------------------------------------------------------------------
# General tiled matmul kernels (bf16 MXU operands, f32 accumulation, fused bias).
# Operands not already bf16 are cast in-kernel (VPU, free under the MXU).
# ---------------------------------------------------------------------------
def _matmul_kernel(a_ref, b_ref, o_ref, acc_ref):
    @pl.when(pl.program_id(2) == 0)
    def _():
        acc_ref[...] = jnp.zeros_like(acc_ref)

    acc_ref[...] += jnp.dot(_to_bf16(a_ref[...]), _to_bf16(b_ref[...]),
                            preferred_element_type=jnp.float32)

    @pl.when(pl.program_id(2) == pl.num_programs(2) - 1)
    def _():
        o_ref[...] = acc_ref[...].astype(o_ref.dtype)


def _matmul_bias_kernel(a_ref, b_ref, bias_ref, o_ref, acc_ref):
    @pl.when(pl.program_id(2) == 0)
    def _():
        acc_ref[...] = jnp.zeros_like(acc_ref)

    acc_ref[...] += jnp.dot(_to_bf16(a_ref[...]), _to_bf16(b_ref[...]),
                            preferred_element_type=jnp.float32)

    @pl.when(pl.program_id(2) == pl.num_programs(2) - 1)
    def _():
        # bias already f32 (pre-cast in wrapper): one fused add + store.
        o_ref[...] = (acc_ref[...] + bias_ref[...]).astype(o_ref.dtype)


def matmul(a, b, bias=None, *, tm=512, tn=512, tk=512,
           out_dtype=jnp.float32, cast_a_in_kernel=False,
           cast_b_in_kernel=False):
    """C = A @ B (+ bias); bf16 operands on the MXU, f32 accumulation.

    If cast_*_in_kernel, the operand is fed in its original dtype and cast to
    bf16 on the VPU inside the kernel (saves a wrapper-side HBM cast pass —
    use when that operand is streamed from HBM roughly once).
    Handles arbitrary (non-128-multiple) shapes via zero-padding.
    """
    m, k = a.shape
    k2, n = b.shape
    assert k == k2

    # Cap tiles at the (aligned) problem size; keep K tiles 256-aligned so the
    # MXU sees clean, non-ragged contraction steps (helps v5e's 4x128^2 MXUs).
    tm = min(tm, _round_up(m, 8))
    tn = min(tn, _round_up(n, 128))
    tk = min(tk, _round_up(k, 128))
    if tk > 256:
        tk = _round_up(tk, 256)
    mp, np_, kp = _round_up(m, tm), _round_up(n, tn), _round_up(k, tk)

    a_p = a if cast_a_in_kernel else _to_bf16(a)
    b_p = b if cast_b_in_kernel else _to_bf16(b)
    a_p = jnp.pad(a_p, ((0, mp - m), (0, kp - k)))
    b_p = jnp.pad(b_p, ((0, kp - k), (0, np_ - n)))

    in_specs = [
        pl.BlockSpec((tm, tk), lambda i, j, kk: (i, kk)),
        pl.BlockSpec((tk, tn), lambda i, j, kk: (kk, j)),
    ]
    inputs = [a_p, b_p]
    if bias is not None:
        bias_p = jnp.pad(bias.astype(jnp.float32).reshape(1, -1),
                         ((0, 0), (0, np_ - n)))
        # bias is only consumed on the last k step; single-buffer it.
        in_specs.append(_spec((1, tn), lambda i, j, kk: (0, j), buffers=1))
        inputs.append(bias_p)
        kernel = _matmul_bias_kernel
    else:
        kernel = _matmul_kernel

    out = pl.pallas_call(
        kernel,
        out_shape=jax.ShapeDtypeStruct((mp, np_), out_dtype),
        grid_spec=pltpu.PrefetchScalarGridSpec(
            num_scalar_prefetch=0,
            grid=(mp // tm, np_ // tn, kp // tk),
            in_specs=in_specs,
            out_specs=pl.BlockSpec((tm, tn), lambda i, j, kk: (i, j)),
            scratch_shapes=[pltpu.VMEM((tm, tn), jnp.float32)],
        ),
        compiler_params=pltpu.CompilerParams(
            dimension_semantics=("parallel", "parallel", "arbitrary"),
            vmem_limit_bytes=_VMEM_LIMIT_BYTES,
        ),
        cost_estimate=pl.CostEstimate(
            flops=2 * m * n * k, transcendentals=0,
            bytes_accessed=(a_p.size * a_p.dtype.itemsize
                            + b_p.size * b_p.dtype.itemsize
                            + mp * np_ * jnp.dtype(out_dtype).itemsize)),
    )(*inputs)
    return out[:m, :n]


def general_gcn_forward(x, adj, weight, bias):
    """Two tiled-matmul path for problems too large for the fused kernel.

    The intermediate is produced directly in bf16 (no f32 HBM round-trip and
    no extra cast pass before the second matmul), adj is streamed once in f32
    with an in-kernel bf16 cast, and tn is chosen to cover the full output
    width so the N^2 adjacency matrix is never re-read.
    """
    n, f_in = x.shape
    f_out = weight.shape[1]

    if f_out <= f_in:
        support = matmul(x, weight, out_dtype=jnp.bfloat16,
                         cast_a_in_kernel=True)                 # [N, F_out] bf16
        tn2 = _round_up(f_out, 128) if f_out <= 1024 else 512
        return matmul(adj, support, bias, tn=tn2,
                      cast_a_in_kernel=(f_out <= 1024))         # adj @ support + b
    else:
        tn1 = _round_up(f_in, 128) if f_in <= 1024 else 512
        tmp = matmul(adj, x, out_dtype=jnp.bfloat16, tn=tn1,
                     cast_a_in_kernel=(f_in <= 1024))           # [N, F_in] bf16
        return matmul(tmp, weight, bias, cast_a_in_kernel=True)  # (adj@x) @ W + b


# ---------------------------------------------------------------------------
# GraphConvolution wrapper (forward semantics of the PyTorch module)
# ---------------------------------------------------------------------------
class GraphConvolution:
    def __init__(self, in_features, out_features, bias=True, *, key):
        self.in_features = in_features
        self.out_features = out_features
        stdv = 1.0 / math.sqrt(out_features)
        wk, bk = jax.random.split(key)
        # Deterministic analogue of .uniform_(-stdv, stdv)
        self.weight = jax.random.uniform(
            wk, (in_features, out_features), jnp.float32, -stdv, stdv)
        if bias:
            self.bias = jax.random.uniform(
                bk, (out_features,), jnp.float32, -stdv, stdv)
        else:
            self.bias = None

    @functools.partial(jax.jit, static_argnums=0)
    def __call__(self, inp, adj):
        n, f_in = inp.shape
        f_out = self.out_features
        # Small/medium problems: single fused kernel (x, W, support resident).
        if _use_fused(n, f_in, f_out):
            return fused_gcn_forward(inp, adj, self.weight, self.bias)
        # Large problems: two tiled matmuls with a bf16 intermediate.
        return general_gcn_forward(inp, adj, self.weight, self.bias)


if __name__ == "__main__":
    key = jax.random.PRNGKey(0)
    k_in, k_adj, k_param, k_a, k_b, k_bias = jax.random.split(key, 6)

    # ---- Test 1: GCN layer forward (demo shapes -> fused single-kernel path) ----
    N, F_IN, F_OUT = 256, 128, 128
    x = jax.random.normal(k_in, (N, F_IN), jnp.float32)
    adj = jax.random.uniform(k_adj, (N, N), jnp.float32) / N
    adj = adj + jnp.eye(N, dtype=jnp.float32)

    gcn = GraphConvolution(F_IN, F_OUT, bias=True, key=k_param)
    out = jax.block_until_ready(gcn(x, adj))
    assert out.shape == (N, F_OUT)

    # Matched-precision reference (bf16 MXU operands, f32 accumulation, f32 bias).
    sup_ref = jnp.dot(x.astype(jnp.bfloat16), gcn.weight.astype(jnp.bfloat16),
                      preferred_element_type=jnp.float32).astype(jnp.bfloat16)
    ref = jnp.dot(adj.astype(jnp.bfloat16), sup_ref,
                  preferred_element_type=jnp.float32) + gcn.bias[None, :]
    assert jnp.allclose(out, ref, atol=2e-3, rtol=2e-3)

    # Loose sanity check against the pure-f32 reference (bf16 quantization only).
    ref_f32 = adj @ (x @ gcn.weight) + gcn.bias[None, :]
    assert jnp.allclose(out, ref_f32, atol=5e-2, rtol=5e-2)

    # ---- Test 2: force the general two-kernel (tiled) path on the same inputs ----
    out_gen = jax.block_until_ready(
        general_gcn_forward(x, adj, gcn.weight, gcn.bias))
    assert out_gen.shape == (N, F_OUT)
    assert jnp.allclose(out_gen, ref, atol=5e-3, rtol=5e-3)

    # ---- Test 3: general tiled matmul(+bias) on non-128-multiple shapes ----
    M2, K2, N2 = 200, 136, 72
    a = jax.random.normal(k_a, (M2, K2), jnp.float32)
    b = jax.random.normal(k_b, (K2, N2), jnp.float32) * 0.1
    bias2 = jax.random.normal(k_bias, (N2,), jnp.float32)
    out2 = jax.block_until_ready(matmul(a, b, bias2, cast_a_in_kernel=True))
    assert out2.shape == (M2, N2)
    ref2 = jnp.dot(a.astype(jnp.bfloat16), b.astype(jnp.bfloat16),
                   preferred_element_type=jnp.float32) + bias2[None, :]
    assert jnp.allclose(out2, ref2, atol=2e-3, rtol=2e-3)

    print("KERNEL_OK")
</pallas_src>

<mosaic_0001>
module attributes {stable_mosaic.version = 11 : i64} {
  func.func @_fused_gcn_bias_kernel(%arg0: i32, %arg1: memref<256x128xf32, #tpu.memory_space<vmem>>, %arg2: memref<128x128xf32, #tpu.memory_space<vmem>>, %arg3: memref<128x256xf32, #tpu.memory_space<vmem>>, %arg4: memref<1x128xf32, #tpu.memory_space<vmem>>, %arg5: memref<128x128xf32, #tpu.memory_space<vmem>>, %arg6: memref<256x128xbf16, #tpu.memory_space<vmem>>) attributes {dimension_semantics = [#tpu.dimension_semantics<arbitrary>], iteration_bounds = array<i64: 2>, scalar_prefetch = 0 : i64, scratch_operands = 1 : i64, tpu.core_type = #tpu.core_type<tc>, window_params = [{pipeline_mode = #tpu.pipeline_mode<synchronous>, transform_indices = @transform_0, window_bounds = array<i64: 256, 128>}, {pipeline_mode = #tpu.pipeline_mode<synchronous>, transform_indices = @transform_1, window_bounds = array<i64: 128, 128>}, {transform_indices = @transform_2, window_bounds = array<i64: 128, 256>}, {pipeline_mode = #tpu.pipeline_mode<synchronous>, transform_indices = @transform_3, window_bounds = array<i64: 1, 128>}, {transform_indices = @transform_4, window_bounds = array<i64: 128, 128>}]} {
    %c0_i32 = arith.constant 0 : i32
    %0 = arith.cmpi eq, %arg0, %c0_i32 : i32
    %1 = arith.extui %0 : i1 to i32
    %c0_i32_0 = arith.constant 0 : i32
    %2 = arith.cmpi ne, %1, %c0_i32_0 : i32
    scf.if %2 {
      %c0_8 = arith.constant 0 : index
      %c0_9 = arith.constant 0 : index
      %11 = vector.load %arg1[%c0_8, %c0_9] : memref<256x128xf32, #tpu.memory_space<vmem>>, vector<256x128xf32>
      %12 = arith.truncf %11 : vector<256x128xf32> to vector<256x128xbf16>
      %c0_10 = arith.constant 0 : index
      %c0_11 = arith.constant 0 : index
      %13 = vector.load %arg2[%c0_10, %c0_11] : memref<128x128xf32, #tpu.memory_space<vmem>>, vector<128x128xf32>
      %14 = arith.truncf %13 : vector<128x128xf32> to vector<128x128xbf16>
      %cst_12 = arith.constant dense<0.000000e+00> : vector<256x128xf32>
      %15 = tpu.matmul %12, %14, %cst_12 {dimension_numbers = #tpu.dot_dimension_numbers<[1], [0], [0], [1], [0, 0, 1, 1], [], []>} : vector<256x128xbf16>, vector<128x128xbf16>, vector<256x128xf32> -> vector<256x128xf32>
      %16 = arith.truncf %15 : vector<256x128xf32> to vector<256x128xbf16>
      %c0_13 = arith.constant 0 : index
      %c0_14 = arith.constant 0 : index
      %17 = vector.load %arg6[%c0_13, %c0_14] : memref<256x128xbf16, #tpu.memory_space<vmem>>, vector<256x128xbf16>
      tpu.vector_store %arg6[%c0_13, %c0_14], %16 {strides = array<i32>} : memref<256x128xbf16, #tpu.memory_space<vmem>>, vector<256x128xbf16>,
    } else {
    }
    %c0 = arith.constant 0 : index
    %c0_1 = arith.constant 0 : index
    %3 = vector.load %arg3[%c0, %c0_1] : memref<128x256xf32, #tpu.memory_space<vmem>>, vector<128x256xf32>
    %4 = arith.truncf %3 : vector<128x256xf32> to vector<128x256xbf16>
    %c0_2 = arith.constant 0 : index
    %c0_3 = arith.constant 0 : index
    %5 = vector.load %arg6[%c0_2, %c0_3] : memref<256x128xbf16, #tpu.memory_space<vmem>>, vector<256x128xbf16>
    %cst = arith.constant dense<0.000000e+00> : vector<128x128xf32>
    %6 = tpu.matmul %4, %5, %cst {dimension_numbers = #tpu.dot_dimension_numbers<[1], [0], [0], [1], [0, 0, 1, 1], [], []>} : vector<128x256xbf16>, vector<256x128xbf16>, vector<128x128xf32> -> vector<128x128xf32>
    %c0_4 = arith.constant 0 : index
    %c0_5 = arith.constant 0 : index
    %7 = vector.load %arg4[%c0_4, %c0_5] : memref<1x128xf32, #tpu.memory_space<vmem>>, vector<1x128xf32>
    %8 = vector.broadcast %7 : vector<1x128xf32> to vector<128x128xf32>
    %9 = arith.addf %6, %8 : vector<128x128xf32>
    %c0_6 = arith.constant 0 : index
    %c0_7 = arith.constant 0 : index
    %10 = vector.load %arg5[%c0_6, %c0_7] : memref<128x128xf32, #tpu.memory_space<vmem>>, vector<128x128xf32>
    tpu.vector_store %arg5[%c0_6, %c0_7], %9 {strides = array<i32>} : memref<128x128xf32, #tpu.memory_space<vmem>>, vector<128x128xf32>,
    return
  }
  func.func @transform_0(%arg0: i32) -> (i32, i32) {
    %c0_i32 = arith.constant 0 : i32
    %c0_i32_0 = arith.constant 0 : i32
    %c0_i32_1 = arith.constant 0 : i32
    return %c0_i32, %c0_i32_0 : i32, i32
  }
  func.func @transform_1(%arg0: i32) -> (i32, i32) {
    %c0_i32 = arith.constant 0 : i32
    %c0_i32_0 = arith.constant 0 : i32
    %c0_i32_1 = arith.constant 0 : i32
    return %c0_i32, %c0_i32_0 : i32, i32
  }
  func.func @transform_2(%arg0: i32) -> (i32, i32) {
    %c0_i32 = arith.constant 0 : i32
    %c0_i32_0 = arith.constant 0 : i32
    return %arg0, %c0_i32 : i32, i32
  }
  func.func @transform_3(%arg0: i32) -> (i32, i32) {
    %c0_i32 = arith.constant 0 : i32
    %c0_i32_0 = arith.constant 0 : i32
    %c0_i32_1 = arith.constant 0 : i32
    return %c0_i32, %c0_i32_0 : i32, i32
  }
  func.func @transform_4(%arg0: i32) -> (i32, i32) {
    %c0_i32 = arith.constant 0 : i32
    %c0_i32_0 = arith.constant 0 : i32
    return %arg0, %c0_i32 : i32, i32
  }
}

</mosaic_0001>

<bundles_post_ra>
// kernel: a_call__.1
= control target key start
LH: loop header
LB: loop body
LE: loop exit
PB: predicated region body
PF: predicated region fallthrough
CT: control target
= control target key end

     0   :  { %9 = vsyncpa [#allocation4], 0  ;;  %s1620_s0 = inlined_call_operand.hbm [shape: f32[256,128], index: 0, kind: input, shape index: {}]   ;;  %s1621_s1 = inlined_call_operand.hbm [shape: f32[128,128], index: 1, kind: input, shape index: {}]   ;;  %s1622_s2 = inlined_call_operand.hbm [shape: f32[256,256], index: 2, kind: input, shape index: {}]   ;;  %s1623_s3 = inlined_call_operand.vmem [shape: f32[1,128], index: 3, kind: input, shape index: {}]   ;;  %s1624_s4 = inlined_call_operand.hbm [shape: f32[256,128], index: 4, kind: output, shape index: {}]  }
   0x1   :  { %10 = vsyncpa [#allocation7], 0 }
   0x2   :  { %11 = vsyncpa [#allocation5], 0 }
   0x3   :  { %13 = vsyncpa [#allocation5 + $0x1], 0  ;;  %s1394_s15 = smov 0   ;;  %s1396_s16 = smov 0  }
   0x4   :  { %s1398_s17 = smov 0   ;;  %s1400_s18 = smov 0  }
   0x5 LB: > { %s1415_s19 = sadd.s32 4294967295, %s1359_s18   ;;  %s883_s20 = sadd.s32 4294967294, %s1359_s18   ;;  %s1359_s18 = sphi %s1400_s18, %s1635_s18   ;;  %s1355_s17 = sphi %s1398_s17, %s1634_s17   ;;  %s1351_s16 = sphi %s1396_s16, %s1633_s16   ;;  %s1347_s15 = sphi %s1394_s15, %s1632_s15  }
   0x6   : > { %p81_p0 = scmp.ne.s32.totalorder %s1351_s16, %s1347_s15  ;;  %p82_p1 = scmp.eq.s32.totalorder %s1415_s19, 0 }
   0x7   : > { %p126_p2 = scmp.eq.s32.totalorder %s1415_s19, 1  ;;  %p132_p3 = scmp.eq.s32.totalorder %s883_s20, 1 }
   0x8   : > { %p1424_p4 = por %p82_p1, %p81_p0  ;;  %p884_p5 = scmp.ge.s32.totalorder %s1359_s18, 1 }
   0x9   : > { %p1429_p6 = por %p132_p3, %p81_p0  ;;  %p139_p7 = scmp.lt.s32.totalorder %s1359_s18, 3 }
   0xa   : > { %s150_s25 = sshll.u32 %s1620_s0, 4  ;;  %s1361_s27 = smov [#allocation3]   ;;  %s151_s25 = int_to_ptr.hbm [resolvable:$true] %s150_s25 }
   0xb   : > { %p1438_p9 = pnand %p884_p5, %p139_p7  ;;  %s152_s28 = sshll.u32 %s1361_s27, 4  ;;  %s153_s28 = int_to_ptr.vmem [resolvable:$true] %s152_s28 }
   0xc   : > { %s164_s5 = sshll.u32 %s1621_s1, 4  ;;  %s1362_s6 = smov 128   ;;  %s165_s5 = int_to_ptr.hbm [resolvable:$true] %s164_s5 }
   0xd   : > { %p1133_p10 = pneg %p1438_p9  ;;  %s1363_s7 = smov 8  }
   0xe   : > { %s1364_s8 = smov [#allocation6]   ;;  %s1451_s10 = sadd.s32 1, %s1359_s18  }
   0xf   : > { %p1134_p11 = pnand %p1133_p10, %p82_p1  ;;  %s166_s9 = sshll.u32 %s1364_s8, 4  ;;  %s167_s9 = int_to_ptr.vmem [resolvable:$true] %s166_s9 }
  0x10   : > { %s68_s11 = sadd.s32 1, %s1355_s17  ;;  %s65_s12 = ssub.s32 %s1359_s18, %s1451_s10 }
  0x11   : > { %1136 = dma.hbm_to_vmem [thread:$0]  (!%p1134_p11), %s151_s25, 4096, %s153_s28, [#allocation4], %s1362_s6, %s1362_s6, %s1363_s7  }
  0x12   : > { %1139 = dma.hbm_to_vmem [thread:$0]  (!%p1134_p11), %s165_s5, 2048, %s167_s9, [#allocation7], %s1362_s6, %s1362_s6, %s1363_s7  }
  0x13   : > { %p75_p13 = scmp.ne.s32.totalorder %s1355_s17, %s1351_s16  ;;  %p66_p0 = scmp.eq.s32.totalorder %s65_s12, 0 }
  0x14   : > { %p76_p3 = scmp.eq.s32.totalorder %s1359_s18, 0  ;;  %p1150_p7 = scmp.lt.s32.totalorder %s1359_s18, 2 }
  0x15   : > { %p1461_p5 = por %p126_p2, %p75_p13  ;;  %s183_s20 = sand.u32 1, %s1359_s18  }
  0x16   : > { %s1467_s14 = scalar_select %p66_p0, %s1355_s17, %s68_s11  }
  0x17   : > { %p77_p10 = por %p76_p3, %p75_p13  ;;  %s185_s23 = sand.u32 1, %s1355_s17  }
  0x18   : > { %s888_s24 = sshll.u32 %s185_s23, 8  ;;  %s968_s25 = sshll.u32 %s1359_s18, 8 }
  0x19   : > { %s193_s29 = scalar_lea.hbm %s1622_s2, %s968_s25  ;;  %s187_s5 = scalar_lea.vmem [#allocation8], %s888_s24 }
  0x1a   : > { %s194_s30 = sshll.u32 %s193_s29, 4  ;;  %s196_s6 = sshll.u32 %s187_s5, 4  ;;  %s195_s30 = int_to_ptr.hbm [resolvable:$true] %s194_s30  ;;  %s197_s6 = int_to_ptr.vmem [resolvable:$true] %s196_s6 }
  0x1b   : > { %p1477_p2 = pnand %p1150_p7, %p77_p10  ;;  %s184_s8 = scalar_lea.sflag [#allocation4], %s183_s20 }
  0x1c   : > { %s1255_s9 = sshra.s32 %s195_s30, 4  ;;  %s1262_s24 = scalar_lea.hbm %s1622_s2, 512  ;;  %s1256_s9 = int_to_ptr.hbm [resolvable:$true] %s1255_s9 }
  0x1d   : > { %s1257_s11 = scalar_lea.hbm %s1256_s9, 256  ;;  %p1259_p13 = pneg %p1477_p2 }
  0x1e   : > { %p1258_p11 = scmp.ne.s32.totalorder %s1256_s9, %s1257_s11  ;;  %p1263_p7 = scmp.lt.s32.totalorder %s1256_s9, %s1622_s2 }
  0x1f   : > { %p1264_p10 = scmp.lt.s32.totalorder %s1262_s24, %s1257_s11 }
  0x20   : > { %p1260_p0 = pnand %p1259_p13, %p1258_p11 }
  0x21   : > { %p1265_p12 = por %p1264_p10, %p1263_p7 }
  0x22   : > { %p1261_p3 = pneg %p1260_p0 }
  0x24   : > { %p1266_p8 = pnand %p1265_p12, %p1261_p3 }
  0x26   : > { %1269 = shalt.err (!%p1266_p8)
}
  0x27   : > { %s1365_s20 = smov 256   ;;  %s1366_s28 = smov 16  }
  0x28   : > { %1143 = dma.hbm_to_vmem [thread:$0]  (!%p1477_p2), %s195_s30, 4096, %s197_s6, %s184_s8, %s1365_s20, %s1365_s20, %s1366_s28  }
  0x29   : > { %208 = sbr.rel (%p1438_p9) target bundleno = 519 (0x207), region = 36 }
  0x2e   : > { %1330 = dma.done.wait (%p82_p1), [#allocation4], 4096  }
  0x2f   : > { %1332 = vsyncadd (%p82_p1), [#allocation4], 4294963200 }
  0x30   : > { %1334 = dma.done.wait (%p82_p1), [#allocation7], 2048  }
  0x31   : > { %1336 = vsyncadd (%p82_p1), [#allocation7], 4294965248  ;;  %s220_s29 = sand.u32 1, %s1415_s19   ;;  %s1503_s30 = sand.u32 1, %s1351_s16  }
  0x32   : > { %s895_s26 = sshll.u32 %s1503_s30, 8  ;;  %s221_s5 = scalar_lea.sflag [#allocation4], %s220_s29 }
  0x33   : > { %s1506_s6 = scalar_lea.vmem [#allocation8], %s895_s26 }
  0x34   : > { %1338 = dma.done.wait (%p1424_p4), %s221_s5, 4096  }
  0x35   : > { %1340 = vsyncadd (%p1424_p4), %s221_s5, 4294963200  ;;  %s896_s7 = sshll.u32 %s1503_s30, 7  ;;  %p1630_p1 = scmp.ne.s32.totalorder %s1415_s19, 0 }
  0x36   : > { %s1513_s8 = scalar_lea.vmem [#allocation9], %s896_s7 }
  0x37   : > { %255 = sbr.rel (%p1630_p1) target bundleno = 287 (0x11f), region = 52 }
  0x3c   : > { %v318_v0 = vld [vmem:[#allocation6 + $0x70] sm:$0xff]  ;;  %v319_v1 = vld [vmem:[#allocation6 + $0x78] sm:$0xff]  ;;  %v316_v2 = vld [vmem:[#allocation6 + $0x60] sm:$0xff] }
  0x3d   : > { %v327_v3 = vpack.c.bf16 %v319_v1, %v318_v0  ;;  %v317_v4 = vld [vmem:[#allocation6 + $0x68] sm:$0xff]  ;;  %v314_v6 = vld [vmem:[#allocation6 + $0x50] sm:$0xff]  ;;  %v315_v7 = vld [vmem:[#allocation6 + $0x58] sm:$0xff] }
  0x3e   : > { %v326_v5 = vpack.c.bf16 %v317_v4, %v316_v2  ;;  %v325_v8 = vpack.c.bf16 %v315_v7, %v314_v6  ;;  %v312_v9 = vld [vmem:[#allocation6 + $0x40] sm:$0xff]  ;;  %v313_v10 = vld [vmem:[#allocation6 + $0x48] sm:$0xff]  ;;  %v310_v12 = vld [vmem:[#allocation6 + $0x30] sm:$0xff] }
  0x3f   : > { %328 = vmatpush.bf16.msra.mxu0 %v327_v3  ;;  %1081 = vmatpush.bf16.msra.mxu1 %v327_v3  ;;  %v324_v11 = vpack.c.bf16 %v313_v10, %v312_v9  ;;  %v311_v13 = vld [vmem:[#allocation6 + $0x38] sm:$0xff]  ;;  %v308_v15 = vld [vmem:[#allocation6 + $0x20] sm:$0xff]  ;;  %v309_v16 = vld [vmem:[#allocation6 + $0x28] sm:$0xff] }
  0x40   : > { %1082 = vmatpush.bf16.msra.mxu2 %v327_v3  ;;  %1083 = vmatpush.bf16.msra.mxu3 %v327_v3  ;;  %v323_v14 = vpack.c.bf16 %v311_v13, %v310_v12  ;;  %v322_v17 = vpack.c.bf16 %v309_v16, %v308_v15  ;;  %v306_v18 = vld [vmem:[#allocation6 + $0x10] sm:$0xff]  ;;  %v307_v19 = vld [vmem:[#allocation6 + $0x18] sm:$0xff]  ;;  %v304_v21 = vld [vmem:[#allocation6] sm:$0xff] }
  0x41   : > { %v321_v20 = vpack.c.bf16 %v307_v19, %v306_v18  ;;  %v305_v22 = vld [vmem:[#allocation6 + $0x8] sm:$0xff]  ;;  %v256_v23 = vld [vmem:[#allocation3] sm:$0xff]  ;;  %v258_v36 = vld [vmem:[#allocation3 + $0x10] sm:$0xff] }
  0x42   : > { %v257_v24 = vld [vmem:[#allocation3 + $0x8] sm:$0xff]  ;;  %v320_v25 = vpack.c.bf16 %v305_v22, %v304_v21  ;;  %v264_v26 = vld [vmem:[#allocation3 + $0x40] sm:$0xff]  ;;  %v259_v37 = vld [vmem:[#allocation3 + $0x18] sm:$0xff] }
  0x43   : > { %329 = vmatpush.bf16.msra.mxu0 %v326_v5  ;;  %1084 = vmatpush.bf16.msra.mxu1 %v326_v5  ;;  %v265_v27 = vld [vmem:[#allocation3 + $0x48] sm:$0xff]  ;;  %v272_v28 = vld [vmem:[#allocation3 + $0x80] sm:$0xff]  ;;  %v288_v32 = vpack.c.bf16 %v257_v24, %v256_v23  ;;  %v266_v38 = vld [vmem:[#allocation3 + $0x50] sm:$0xff]  ;;  %v289_v44 = vpack.c.bf16 %v259_v37, %v258_v36 }
  0x44   : > { %1085 = vmatpush.bf16.msra.mxu2 %v326_v5  ;;  %1086 = vmatpush.bf16.msra.mxu3 %v326_v5  ;;  %v273_v29 = vld [vmem:[#allocation3 + $0x88] sm:$0xff]  ;;  %v280_v30 = vld [vmem:[#allocation3 + $0xc0] sm:$0xff]  ;;  %v292_v33 = vpack.c.bf16 %v265_v27, %v264_v26  ;;  %v267_v39 = vld [vmem:[#allocation3 + $0x58] sm:$0xff] }
  0x45   : > { %v281_v31 = vld [vmem:[#allocation3 + $0xc8] sm:$0xff]  ;;  %v296_v34 = vpack.c.bf16 %v273_v29, %v272_v28  ;;  %v274_v40 = vld [vmem:[#allocation3 + $0x90] sm:$0xff]  ;;  %v275_v41 = vld [vmem:[#allocation3 + $0x98] sm:$0xff]  ;;  %v293_v45 = vpack.c.bf16 %v267_v39, %v266_v38 }
  0x46   : > { %v300_v35 = vpack.c.bf16 %v281_v31, %v280_v30  ;;  %v282_v42 = vld [vmem:[#allocation3 + $0xd0] sm:$0xff]  ;;  %v283_v43 = vld [vmem:[#allocation3 + $0xd8] sm:$0xff]  ;;  %v297_v46 = vpack.c.bf16 %v275_v41, %v274_v40  ;;  %v260_v48 = vld [vmem:[#allocation3 + $0x20] sm:$0xff] }
  0x47   : > { %330 = vmatpush.bf16.msra.mxu0 %v325_v8  ;;  %1087 = vmatpush.bf16.msra.mxu1 %v325_v8  ;;  %v301_v47 = vpack.c.bf16 %v283_v43, %v282_v42  ;;  %v261_v49 = vld [vmem:[#allocation3 + $0x28] sm:$0xff]  ;;  %v268_v50 = vld [vmem:[#allocation3 + $0x60] sm:$0xff]  ;;  %v262_v60 = vld [vmem:[#allocation3 + $0x30] sm:$0xff] }
  0x48   : > { %1088 = vmatpush.bf16.msra.mxu2 %v325_v8  ;;  %1089 = vmatpush.bf16.msra.mxu3 %v325_v8  ;;  %v269_v51 = vld [vmem:[#allocation3 + $0x68] sm:$0xff]  ;;  %v276_v52 = vld [vmem:[#allocation3 + $0xa0] sm:$0xff]  ;;  %v290_v56 = vpack.c.bf16 %v261_v49, %v260_v48  ;;  %v263_v61 = vld [vmem:[#allocation3 + $0x38] sm:$0xff] }
  0x49   : > { %v277_v53 = vld [vmem:[#allocation3 + $0xa8] sm:$0xff]  ;;  %v284_v54 = vld [vmem:[#allocation3 + $0xe0] sm:$0xff]  ;;  %v294_v57 = vpack.c.bf16 %v269_v51, %v268_v50  ;;  %v270_v62 = vld [vmem:[#allocation3 + $0x70] sm:$0xff]  ;;  %v291_v4 = vpack.c.bf16 %v263_v61, %v262_v60 }
  0x4a   : > { %v285_v55 = vld [vmem:[#allocation3 + $0xe8] sm:$0xff]  ;;  %v298_v58 = vpack.c.bf16 %v277_v53, %v276_v52  ;;  %v271_v63 = vld [vmem:[#allocation3 + $0x78] sm:$0xff]  ;;  %v278_v0 = vld [vmem:[#allocation3 + $0xb0] sm:$0xff] }
  0x4b   : > { %331 = vmatpush.bf16.msra.mxu0 %v324_v11  ;;  %1090 = vmatpush.bf16.msra.mxu1 %v324_v11  ;;  %v302_v59 = vpack.c.bf16 %v285_v55, %v284_v54  ;;  %v279_v1 = vld [vmem:[#allocation3 + $0xb8] sm:$0xff]  ;;  %v286_v2 = vld [vmem:[#allocation3 + $0xf0] sm:$0xff]  ;;  %v295_v5 = vpack.c.bf16 %v271_v63, %v270_v62 }
  0x4c   : > { %1091 = vmatpush.bf16.msra.mxu2 %v324_v11  ;;  %1092 = vmatpush.bf16.msra.mxu3 %v324_v11  ;;  %v287_v3 = vld [vmem:[#allocation3 + $0xf8] sm:$0xff]  ;;  %v299_v6 = vpack.c.bf16 %v279_v1, %v278_v0 }
  0x4d   : > { %v303_v7 = vpack.c.bf16 %v287_v3, %v286_v2 }
  0x4f   : > { %332 = vmatpush.bf16.msra.mxu0 %v323_v14  ;;  %1093 = vmatpush.bf16.msra.mxu1 %v323_v14 }
  0x50   : > { %1094 = vmatpush.bf16.msra.mxu2 %v323_v14  ;;  %1095 = vmatpush.bf16.msra.mxu3 %v323_v14 }
  0x53   : > { %333 = vmatpush.bf16.msra.mxu0 %v322_v17  ;;  %1096 = vmatpush.bf16.msra.mxu1 %v322_v17 }
  0x54   : > { %1097 = vmatpush.bf16.msra.mxu2 %v322_v17  ;;  %1098 = vmatpush.bf16.msra.mxu3 %v322_v17 }
  0x57   : > { %334 = vmatpush.bf16.msra.mxu0 %v321_v20  ;;  %1099 = vmatpush.bf16.msra.mxu1 %v321_v20 }
  0x58   : > { %1100 = vmatpush.bf16.msra.mxu2 %v321_v20  ;;  %1101 = vmatpush.bf16.msra.mxu3 %v321_v20 }
  0x5b   : > { %335 = vmatpush.bf16.msra.mxu0 %v320_v25  ;;  %1102 = vmatpush.bf16.msra.mxu1 %v320_v25 }
  0x5c   : > { %1103 = vmatpush.bf16.msra.mxu2 %v320_v25  ;;  %1104 = vmatpush.bf16.msra.mxu3 %v320_v25 }
  0x5e   : > { %336 = vmatmul.bf16.vlgmr.msra.gmra.mxu0 %v288_v32  ;;  %356 = vmatmul.bf16.vlgmr.msra.gmra.mxu1 %v292_v33 }
  0x5f   : > { %376 = vmatmul.bf16.vlgmr.msra.gmra.mxu2 %v296_v34  ;;  %396 = vmatmul.bf16.vlgmr.msra.gmra.mxu3 %v300_v35 }
  0x6e   : > { %341 = vmatmul.bf16.gmra.mxu0 %v289_v44  ;;  %361 = vmatmul.bf16.gmra.mxu1 %v293_v45 }
  0x6f   : > { %381 = vmatmul.bf16.gmra.mxu2 %v297_v46  ;;  %401 = vmatmul.bf16.gmra.mxu3 %v301_v47 }
  0x7e   : > { %346 = vmatmul.bf16.gmra.mxu0 %v290_v56  ;;  %366 = vmatmul.bf16.gmra.mxu1 %v294_v57 }
  0x7f   : > { %386 = vmatmul.bf16.gmra.mxu2 %v298_v58  ;;  %406 = vmatmul.bf16.gmra.mxu3 %v302_v59 }
  0x8e   : > { %351 = vmatmul.bf16.gmra.mxu0 %v291_v4  ;;  %371 = vmatmul.bf16.gmra.mxu1 %v295_v5 }
  0x8f   : > { %391 = vmatmul.bf16.gmra.mxu2 %v299_v6  ;;  %411 = vmatmul.bf16.gmra.mxu3 %v303_v7 }
  0xdb   : > { %v337_v8 = vpop.f32.mrf.mxu0  ;;  %v357_v9 = vpop.f32.mrf.mxu1 }
  0xe2   : > { %v377_v10 = vpop.f32.mrf.mxu2  ;;  %v397_v11 = vpop.f32.mrf.mxu3 }
  0xe3   : > { %v339_v12 = vpop.f32.mrf.mxu0  ;;  %v359_v13 = vpop.f32.mrf.mxu1 }
  0xe4   : > { %v989_v14 = vpack.c.bf16 %v339_v12, %v337_v8  ;;  %v1009_v15 = vpack.c.bf16 %v359_v13, %v357_v9 }
  0xe6   : > { %990 = vst [vmem:[#allocation2 + $0x30] sm:$0xff] %v989_v14  }
  0xe7   : > { %1069 = vst [vmem:[#allocation2 + $0x50] sm:$0xff] %v1009_v15  }
  0xea   : > { %v379_v16 = vpop.f32.mrf.mxu2  ;;  %v399_v17 = vpop.f32.mrf.mxu3 }
  0xeb   : > { %v1029_v18 = vpack.c.bf16 %v379_v16, %v377_v10  ;;  %v1049_v19 = vpack.c.bf16 %v399_v17, %v397_v11  ;;  %v342_v20 = vpop.f32.mrf.mxu0  ;;  %v362_v21 = vpop.f32.mrf.mxu1 }
  0xed   : > { %1073 = vst [vmem:[#allocation2 + $0x40] sm:$0xff] %v1029_v18  }
  0xee   : > { %1077 = vst [vmem:[#allocation2 + $0x60] sm:$0xff] %v1049_v19  }
  0xf2   : > { %v382_v22 = vpop.f32.mrf.mxu2  ;;  %v402_v23 = vpop.f32.mrf.mxu3 }
  0xf3   : > { %v344_v24 = vpop.f32.mrf.mxu0  ;;  %v364_v25 = vpop.f32.mrf.mxu1 }
  0xf4   : > { %v994_v26 = vpack.c.bf16 %v344_v24, %v342_v20  ;;  %v1014_v27 = vpack.c.bf16 %v364_v25, %v362_v21 }
  0xf6   : > { %1066 = vst [vmem:[#allocation2] sm:$0xff] %v994_v26  }
  0xf7   : > { %1070 = vst [vmem:[#allocation2 + $0x68] sm:$0xff] %v1014_v27  }
  0xfa   : > { %v384_v28 = vpop.f32.mrf.mxu2  ;;  %v404_v29 = vpop.f32.mrf.mxu3 }
  0xfb   : > { %v1034_v30 = vpack.c.bf16 %v384_v28, %v382_v22  ;;  %v1054_v31 = vpack.c.bf16 %v404_v29, %v402_v23  ;;  %v347_v32 = vpop.f32.mrf.mxu0  ;;  %v367_v33 = vpop.f32.mrf.mxu1 }
  0xfd   : > { %1074 = vst [vmem:[#allocation2 + $0x20] sm:$0xff] %v1034_v30  }
  0xfe   : > { %1078 = vst [vmem:[#allocation2 + $0x70] sm:$0xff] %v1054_v31  }
 0x102   : > { %v387_v34 = vpop.f32.mrf.mxu2  ;;  %v407_v35 = vpop.f32.mrf.mxu3 }
 0x103   : > { %v349_v36 = vpop.f32.mrf.mxu0  ;;  %v369_v37 = vpop.f32.mrf.mxu1 }
 0x104   : > { %v999_v38 = vpack.c.bf16 %v349_v36, %v347_v32  ;;  %v1019_v39 = vpack.c.bf16 %v369_v37, %v367_v33 }
 0x106   : > { %1067 = vst [vmem:[#allocation2 + $0x58] sm:$0xff] %v999_v38  }
 0x107   : > { %1071 = vst [vmem:[#allocation2 + $0x8] sm:$0xff] %v1019_v39  }
 0x10a   : > { %v389_v40 = vpop.f32.mrf.mxu2  ;;  %v409_v41 = vpop.f32.mrf.mxu3 }
 0x10b   : > { %v1039_v42 = vpack.c.bf16 %v389_v40, %v387_v34  ;;  %v1059_v43 = vpack.c.bf16 %v409_v41, %v407_v35  ;;  %v352_v44 = vpop.f32.mrf.mxu0  ;;  %v372_v45 = vpop.f32.mrf.mxu1 }
 0x10d   : > { %1075 = vst [vmem:[#allocation2 + $0x10] sm:$0xff] %v1039_v42  }
 0x10e   : > { %1079 = vst [vmem:[#allocation2 + $0x78] sm:$0xff] %v1059_v43  }
 0x112   : > { %v392_v46 = vpop.f32.mrf.mxu2  ;;  %v412_v47 = vpop.f32.mrf.mxu3 }
 0x113   : > { %v354_v48 = vpop.f32.mrf.mxu0  ;;  %v374_v49 = vpop.f32.mrf.mxu1 }
 0x114   : > { %v1004_v50 = vpack.c.bf16 %v354_v48, %v352_v44  ;;  %v1024_v51 = vpack.c.bf16 %v374_v49, %v372_v45 }
 0x116   : > { %1068 = vst [vmem:[#allocation2 + $0x18] sm:$0xff] %v1004_v50  }
 0x117   : > { %1072 = vst [vmem:[#allocation2 + $0x48] sm:$0xff] %v1024_v51  }
 0x11a   : > { %v394_v52 = vpop.f32.mrf.mxu2  ;;  %v414_v53 = vpop.f32.mrf.mxu3 }
 0x11b   : > { %v1044_v54 = vpack.c.bf16 %v394_v52, %v392_v46  ;;  %v1064_v55 = vpack.c.bf16 %v414_v53, %v412_v47 }
 0x11d   : > { %1076 = vst [vmem:[#allocation2 + $0x38] sm:$0xff] %v1044_v54  }
 0x11e   : > { %1080 = vst [vmem:[#allocation2 + $0x28] sm:$0xff] %v1064_v55  }
 0x11f PF: > { %v976_v56 = vld [vmem:[#allocation2 + $0x48] sm:$0xff]  ;;  %v983_v59 = vld [vmem:[#allocation2 + $0x78] sm:$0xff]  ;;  %v982_v61 = vld [vmem:[#allocation2 + $0x70] sm:$0xff]  ;;  %s985_s11 = sshll.u32 %s1415_s19, 7  ;;  %s788_s25 = sshll.u32 %s1513_s8, 4  ;;  %s789_s25 = int_to_ptr.vmem [resolvable:$true] %s788_s25 }
 0x120   : > { %661 = vmatpush.bf16.msra.mxu0 %v976_v56  ;;  %1105 = vmatpush.bf16.msra.mxu2 %v976_v56  ;;  %v975_v58 = vld [vmem:[#allocation2 + $0x8] sm:$0xff]  ;;  %v973_v62 = vld [vmem:[#allocation2 + $0x50] sm:$0xff]  ;;  %v981_v63 = vld [vmem:[#allocation2 + $0x60] sm:$0xff]  ;;  %s787_s24 = scalar_lea.hbm %s1624_s4, %s985_s11  ;;  %s776_s19 = scalar_lea.sflag [#allocation5], %s1503_s30 }
 0x121   : > { %v974_v60 = vld [vmem:[#allocation2 + $0x68] sm:$0xff]  ;;  %v972_v0 = vld [vmem:[#allocation2 + $0x18] sm:$0xff]  ;;  %v979_v3 = vld [vmem:[#allocation2 + $0x10] sm:$0xff]  ;;  %s790_s27 = sshll.u32 %s787_s24, 4  ;;  %s1305_s5 = scalar_lea.hbm %s1624_s4, 256  ;;  %s791_s27 = int_to_ptr.hbm [resolvable:$true] %s790_s27 }
 0x122   : > { %v971_v2 = vld [vmem:[#allocation2 + $0x58] sm:$0xff]  ;;  %v970_v4 = vld [vmem:[#allocation2] sm:$0xff]  ;;  %v969_v6 = vld [vmem:[#allocation2 + $0x30] sm:$0xff]  ;;  %s1299_s20 = sshra.s32 %s791_s27, 4  ;;  %s1300_s20 = int_to_ptr.hbm [resolvable:$true] %s1299_s20 }
 0x123   : > { %v978_v5 = vld [vmem:[#allocation2 + $0x20] sm:$0xff]  ;;  %v483_v9 = vld [vmem:[%s1506_s6 + $0x10] sm:$0xff]  ;;  %v482_v12 = vld [vmem:[%s1506_s6 + $0x8] sm:$0xff]  ;;  %s1301_s28 = scalar_lea.hbm %s1300_s20, 128  ;;  %p1306_p12 = scmp.lt.s32.totalorder %s1300_s20, %s1624_s4 }
 0x124   : > { %662 = vmatpush.bf16.msra.mxu0 %v975_v58  ;;  %1106 = vmatpush.bf16.msra.mxu2 %v975_v58  ;;  %v980_v1 = vld [vmem:[#allocation2 + $0x38] sm:$0xff]  ;;  %v977_v7 = vld [vmem:[#allocation2 + $0x40] sm:$0xff]  ;;  %v499_v11 = vld [vmem:[%s1506_s6 + $0x90] sm:$0xff]  ;;  %p1302_p4 = scmp.ne.s32.totalorder %s1300_s20, %s1301_s28  ;;  %p1307_p2 = scmp.lt.s32.totalorder %s1305_s5, %s1301_s28 }
 0x125   : > { %v984_v57 = vld [vmem:[#allocation2 + $0x28] sm:$0xff]  ;;  %v481_v8 = vld [vmem:[%s1506_s6] sm:$0xff]  ;;  %v484_v13 = vld [vmem:[%s1506_s6 + $0x18] sm:$0xff] }
 0x126   : > { %710 = vmatpush.bf16.msra.mxu1 %v984_v57  ;;  %1113 = vmatpush.bf16.msra.mxu3 %v984_v57  ;;  %v497_v10 = vld [vmem:[%s1506_s6 + $0x80] sm:$0xff]  ;;  %v498_v14 = vld [vmem:[%s1506_s6 + $0x88] sm:$0xff]  ;;  %v500_v15 = vld [vmem:[%s1506_s6 + $0x98] sm:$0xff]  ;;  %v513_v16 = vpack.c.bf16 %v483_v9, %v481_v8  ;;  %v514_v18 = vpack.c.bf16 %v484_v13, %v482_v12  ;;  %p1303_p8 = pnand %p1302_p4, %p1461_p5  ;;  %p1308_p11 = por %p1307_p2, %p1306_p12 }
 0x127   : > { %v521_v17 = vpack.c.bf16 %v499_v11, %v497_v10  ;;  %v522_v19 = vpack.c.bf16 %v500_v15, %v498_v14  ;;  %v485_v20 = vld [vmem:[%s1506_s6 + $0x20] sm:$0xff]  ;;  %v487_v21 = vld [vmem:[%s1506_s6 + $0x30] sm:$0xff]  ;;  %v486_v24 = vld [vmem:[%s1506_s6 + $0x28] sm:$0xff] }
 0x128   : > { %663 = vmatpush.bf16.msra.mxu0 %v974_v60  ;;  %1107 = vmatpush.bf16.msra.mxu2 %v974_v60  ;;  %v501_v22 = vld [vmem:[%s1506_s6 + $0xa0] sm:$0xff]  ;;  %v503_v23 = vld [vmem:[%s1506_s6 + $0xb0] sm:$0xff]  ;;  %v488_v25 = vld [vmem:[%s1506_s6 + $0x38] sm:$0xff]  ;;  %v515_v28 = vpack.c.bf16 %v487_v21, %v485_v20  ;;  %p1304_p9 = pneg %p1303_p8 }
 0x129   : > { %v502_v26 = vld [vmem:[%s1506_s6 + $0xa8] sm:$0xff]  ;;  %v504_v27 = vld [vmem:[%s1506_s6 + $0xb8] sm:$0xff]  ;;  %v523_v29 = vpack.c.bf16 %v503_v23, %v501_v22  ;;  %v516_v30 = vpack.c.bf16 %v488_v25, %v486_v24  ;;  %v489_v32 = vld [vmem:[%s1506_s6 + $0x40] sm:$0xff] }
 0x12a   : > { %711 = vmatpush.bf16.msra.mxu1 %v983_v59  ;;  %1114 = vmatpush.bf16.msra.mxu3 %v983_v59  ;;  %v524_v31 = vpack.c.bf16 %v504_v27, %v502_v26  ;;  %v491_v33 = vld [vmem:[%s1506_s6 + $0x50] sm:$0xff]  ;;  %v505_v34 = vld [vmem:[%s1506_s6 + $0xc0] sm:$0xff]  ;;  %v490_v36 = vld [vmem:[%s1506_s6 + $0x48] sm:$0xff]  ;;  %p1309_p13 = pnand %p1308_p11, %p1304_p9 }
 0x12b   : > { %v507_v35 = vld [vmem:[%s1506_s6 + $0xd0] sm:$0xff]  ;;  %v492_v37 = vld [vmem:[%s1506_s6 + $0x58] sm:$0xff]  ;;  %v506_v38 = vld [vmem:[%s1506_s6 + $0xc8] sm:$0xff]  ;;  %v517_v40 = vpack.c.bf16 %v491_v33, %v489_v32 }
 0x12c   : > { %664 = vmatpush.bf16.msra.mxu0 %v973_v62  ;;  %1108 = vmatpush.bf16.msra.mxu2 %v973_v62  ;;  %v508_v39 = vld [vmem:[%s1506_s6 + $0xd8] sm:$0xff]  ;;  %v525_v41 = vpack.c.bf16 %v507_v35, %v505_v34  ;;  %v518_v42 = vpack.c.bf16 %v492_v37, %v490_v36  ;;  %v493_v44 = vld [vmem:[%s1506_s6 + $0x60] sm:$0xff]  ;;  %v495_v45 = vld [vmem:[%s1506_s6 + $0x70] sm:$0xff] }
 0x12d   : > { %v526_v43 = vpack.c.bf16 %v508_v39, %v506_v38  ;;  %v509_v46 = vld [vmem:[%s1506_s6 + $0xe0] sm:$0xff]  ;;  %v511_v47 = vld [vmem:[%s1506_s6 + $0xf0] sm:$0xff]  ;;  %v494_v48 = vld [vmem:[%s1506_s6 + $0x68] sm:$0xff]  ;;  %v519_v52 = vpack.c.bf16 %v495_v45, %v493_v44 }
 0x12e   : > { %712 = vmatpush.bf16.msra.mxu1 %v982_v61  ;;  %1115 = vmatpush.bf16.msra.mxu3 %v982_v61  ;;  %v496_v49 = vld [vmem:[%s1506_s6 + $0x78] sm:$0xff]  ;;  %v510_v50 = vld [vmem:[%s1506_s6 + $0xe8] sm:$0xff]  ;;  %v527_v53 = vpack.c.bf16 %v511_v47, %v509_v46  ;;  %v1552_v56 = vld [vmem:[%s1623_s3] ss:$0 sm:$0xff] }
 0x12f   : > { %v512_v51 = vld [vmem:[%s1506_s6 + $0xf8] sm:$0xff]  ;;  %v520_v54 = vpack.c.bf16 %v496_v49, %v494_v48 }
 0x130   : > { %665 = vmatpush.bf16.msra.mxu0 %v972_v0  ;;  %1109 = vmatpush.bf16.msra.mxu2 %v972_v0  ;;  %v528_v55 = vpack.c.bf16 %v512_v51, %v510_v50 }
 0x132   : > { %713 = vmatpush.bf16.msra.mxu1 %v981_v63  ;;  %1116 = vmatpush.bf16.msra.mxu3 %v981_v63 }
 0x134   : > { %666 = vmatpush.bf16.msra.mxu0 %v971_v2  ;;  %1110 = vmatpush.bf16.msra.mxu2 %v971_v2 }
 0x136   : > { %714 = vmatpush.bf16.msra.mxu1 %v980_v1  ;;  %1117 = vmatpush.bf16.msra.mxu3 %v980_v1 }
 0x138   : > { %667 = vmatpush.bf16.msra.mxu0 %v970_v4  ;;  %1111 = vmatpush.bf16.msra.mxu2 %v970_v4 }
 0x13a   : > { %715 = vmatpush.bf16.msra.mxu1 %v979_v3  ;;  %1118 = vmatpush.bf16.msra.mxu3 %v979_v3 }
 0x13c   : > { %668 = vmatpush.bf16.msra.mxu0 %v969_v6  ;;  %1112 = vmatpush.bf16.msra.mxu2 %v969_v6 }
 0x13e   : > { %716 = vmatpush.bf16.msra.mxu1 %v978_v5  ;;  %1119 = vmatpush.bf16.msra.mxu3 %v978_v5 }
 0x13f   : > { %669 = vmatmul.bf16.vlgmr.msra.gmra.mxu0 %v513_v16  ;;  %689 = vmatmul.bf16.vlgmr.msra.gmra.mxu2 %v521_v17 }
 0x142   : > { %717 = vmatpush.bf16.msra.mxu1 %v977_v7  ;;  %1120 = vmatpush.bf16.msra.mxu3 %v977_v7 }
 0x145   : > { %718 = vmatmul.bf16.vlgmr.msra.gmra.mxu1 %v514_v18  ;;  %738 = vmatmul.bf16.vlgmr.msra.gmra.mxu3 %v522_v19 }
 0x14f   : > { %674 = vmatmul.bf16.gmra.mxu0 %v515_v28  ;;  %694 = vmatmul.bf16.gmra.mxu2 %v523_v29 }
 0x155   : > { %723 = vmatmul.bf16.gmra.mxu1 %v516_v30  ;;  %743 = vmatmul.bf16.gmra.mxu3 %v524_v31 }
 0x15f   : > { %679 = vmatmul.bf16.gmra.mxu0 %v517_v40  ;;  %699 = vmatmul.bf16.gmra.mxu2 %v525_v41 }
 0x165   : > { %728 = vmatmul.bf16.gmra.mxu1 %v518_v42  ;;  %748 = vmatmul.bf16.gmra.mxu3 %v526_v43 }
 0x16f   : > { %684 = vmatmul.bf16.gmra.mxu0 %v519_v52  ;;  %704 = vmatmul.bf16.gmra.mxu2 %v527_v53 }
 0x175   : > { %733 = vmatmul.bf16.gmra.mxu1 %v520_v54  ;;  %753 = vmatmul.bf16.gmra.mxu3 %v528_v55 }
 0x1bc   : > { %v670_v57 = vpop.f32.mrf.mxu0 }
 0x1bd   : > { %v671_v58 = vadd.f32 %v1552_v56, %v670_v57 }
 0x1c2   : > { %v719_v59 = vpop.f32.mrf.mxu1  ;;  %v690_v61 = vpop.f32.mrf.mxu2 }
 0x1c3   : > { %v720_v60 = vadd.f32 %v719_v59, %v671_v58  ;;  %v691_v62 = vadd.f32 %v1552_v56, %v690_v61 }
 0x1c4   : > { %v672_v0 = vpop.f32.mrf.mxu0 }
 0x1c5   : > { %759 = vst [vmem:[%s1513_s8] sm:$0xff] %v720_v60  ;;  %v673_v2 = vadd.f32 %v1552_v56, %v672_v0 }
 0x1c8   : > { %v739_v63 = vpop.f32.mrf.mxu3 }
 0x1c9   : > { %v740_v1 = vadd.f32 %v739_v63, %v691_v62 }
 0x1ca   : > { %v721_v3 = vpop.f32.mrf.mxu1  ;;  %v692_v5 = vpop.f32.mrf.mxu2 }
 0x1cb   : > { %767 = vst [vmem:[%s1513_s8 + $0x40] sm:$0xff] %v740_v1  ;;  %v722_v4 = vadd.f32 %v721_v3, %v673_v2  ;;  %v693_v6 = vadd.f32 %v1552_v56, %v692_v5 }
 0x1cc   : > { %v675_v8 = vpop.f32.mrf.mxu0 }
 0x1cd   : > { %760 = vst [vmem:[%s1513_s8 + $0x8] sm:$0xff] %v722_v4  ;;  %v676_v10 = vadd.f32 %v1552_v56, %v675_v8 }
 0x1d0   : > { %v741_v7 = vpop.f32.mrf.mxu3 }
 0x1d1   : > { %v742_v9 = vadd.f32 %v741_v7, %v693_v6 }
 0x1d2   : > { %v724_v11 = vpop.f32.mrf.mxu1  ;;  %v695_v13 = vpop.f32.mrf.mxu2 }
 0x1d3   : > { %768 = vst [vmem:[%s1513_s8 + $0x48] sm:$0xff] %v742_v9  ;;  %v725_v12 = vadd.f32 %v724_v11, %v676_v10  ;;  %v696_v14 = vadd.f32 %v1552_v56, %v695_v13 }
 0x1d4   : > { %v677_v16 = vpop.f32.mrf.mxu0 }
 0x1d5   : > { %761 = vst [vmem:[%s1513_s8 + $0x10] sm:$0xff] %v725_v12  ;;  %v678_v18 = vadd.f32 %v1552_v56, %v677_v16 }
 0x1d8   : > { %v744_v15 = vpop.f32.mrf.mxu3 }
 0x1d9   : > { %v745_v17 = vadd.f32 %v744_v15, %v696_v14 }
 0x1da   : > { %v726_v19 = vpop.f32.mrf.mxu1  ;;  %v697_v21 = vpop.f32.mrf.mxu2 }
 0x1db   : > { %769 = vst [vmem:[%s1513_s8 + $0x50] sm:$0xff] %v745_v17  ;;  %v727_v20 = vadd.f32 %v726_v19, %v678_v18  ;;  %v698_v22 = vadd.f32 %v1552_v56, %v697_v21 }
 0x1dc   : > { %v680_v24 = vpop.f32.mrf.mxu0 }
 0x1dd   : > { %762 = vst [vmem:[%s1513_s8 + $0x18] sm:$0xff] %v727_v20  ;;  %v681_v26 = vadd.f32 %v1552_v56, %v680_v24 }
 0x1e0   : > { %v746_v23 = vpop.f32.mrf.mxu3 }
 0x1e1   : > { %v747_v25 = vadd.f32 %v746_v23, %v698_v22 }
 0x1e2   : > { %v729_v27 = vpop.f32.mrf.mxu1  ;;  %v700_v29 = vpop.f32.mrf.mxu2 }
 0x1e3   : > { %770 = vst [vmem:[%s1513_s8 + $0x58] sm:$0xff] %v747_v25  ;;  %v730_v28 = vadd.f32 %v729_v27, %v681_v26  ;;  %v701_v30 = vadd.f32 %v1552_v56, %v700_v29 }
 0x1e4   : > { %v682_v32 = vpop.f32.mrf.mxu0 }
 0x1e5   : > { %763 = vst [vmem:[%s1513_s8 + $0x20] sm:$0xff] %v730_v28  ;;  %v683_v34 = vadd.f32 %v1552_v56, %v682_v32 }
 0x1e8   : > { %v749_v31 = vpop.f32.mrf.mxu3 }
 0x1e9   : > { %v750_v33 = vadd.f32 %v749_v31, %v701_v30 }
 0x1ea   : > { %v731_v35 = vpop.f32.mrf.mxu1  ;;  %v702_v37 = vpop.f32.mrf.mxu2 }
 0x1eb   : > { %771 = vst [vmem:[%s1513_s8 + $0x60] sm:$0xff] %v750_v33  ;;  %v732_v36 = vadd.f32 %v731_v35, %v683_v34  ;;  %v703_v38 = vadd.f32 %v1552_v56, %v702_v37 }
 0x1ec   : > { %v685_v40 = vpop.f32.mrf.mxu0 }
 0x1ed   : > { %764 = vst [vmem:[%s1513_s8 + $0x28] sm:$0xff] %v732_v36  ;;  %v686_v42 = vadd.f32 %v1552_v56, %v685_v40 }
 0x1f0   : > { %v751_v39 = vpop.f32.mrf.mxu3 }
 0x1f1   : > { %v752_v41 = vadd.f32 %v751_v39, %v703_v38 }
 0x1f2   : > { %v734_v43 = vpop.f32.mrf.mxu1  ;;  %v705_v45 = vpop.f32.mrf.mxu2 }
 0x1f3   : > { %772 = vst [vmem:[%s1513_s8 + $0x68] sm:$0xff] %v752_v41  ;;  %v735_v44 = vadd.f32 %v734_v43, %v686_v42  ;;  %v706_v46 = vadd.f32 %v1552_v56, %v705_v45 }
 0x1f4   : > { %v687_v48 = vpop.f32.mrf.mxu0 }
 0x1f5   : > { %765 = vst [vmem:[%s1513_s8 + $0x30] sm:$0xff] %v735_v44  ;;  %v688_v50 = vadd.f32 %v1552_v56, %v687_v48 }
 0x1f8   : > { %v754_v47 = vpop.f32.mrf.mxu3 }
 0x1f9   : > { %v755_v49 = vadd.f32 %v754_v47, %v706_v46 }
 0x1fa   : > { %v736_v51 = vpop.f32.mrf.mxu1  ;;  %v707_v53 = vpop.f32.mrf.mxu2 }
 0x1fb   : > { %773 = vst [vmem:[%s1513_s8 + $0x70] sm:$0xff] %v755_v49  ;;  %v737_v52 = vadd.f32 %v736_v51, %v688_v50  ;;  %v708_v54 = vadd.f32 %v1552_v56, %v707_v53 }
 0x1fd   : > { %766 = vst [vmem:[%s1513_s8 + $0x38] sm:$0xff] %v737_v52 }
 0x200   : > { %v756_v55 = vpop.f32.mrf.mxu3 }
 0x201   : > { %v757_v57 = vadd.f32 %v756_v55, %v708_v54 }
 0x203   : > { %774 = vst [vmem:[%s1513_s8 + $0x78] sm:$0xff] %v757_v57 }
 0x204   : > { %1312 = shalt.err (!%p1309_p13)
}
 0x205   : > { %s1367_s30 = smov 128   ;;  %s1368_s8 = smov 8  }
 0x206   : > { %1131 = dma.vmem_to_hbm [thread:$0]  (%p1461_p5), %s789_s25, 2048, %s791_s27, %s776_s19, %s1367_s30, %s1367_s30, %s1368_s8  }
 0x207 PF: > { %s805_s21 = sand.u32 1, %s1347_s15   ;;  %p1631_p0 = scmp.ge.s32.totalorder %s1359_s18, 2 }
 0x208   : > { %s806_s9 = scalar_lea.sflag [#allocation5], %s805_s21 }
 0x209   : > { %p1145_p3 = pnand %p1631_p0, %p1429_p6 }
 0x20b   : > { %p1146_p7 = pneg %p1145_p3 }
 0x20d   : > { %1342 = dma.done.wait (%p1146_p7), %s806_s9, 2048  }
 0x20e   : > { %1344 = vsyncadd (%p1146_p7), %s806_s9, 4294965248  ;;  %p16_p10 = scmp.ge.s32.totalorder %s1451_s10, 4   ;;  %s1632_s15 = smov %s1351_s16 }
 0x20f   : > { %s1633_s16 = smov %s1355_s17  ;;  %s1634_s17 = smov %s1467_s14 }
 0x210   : > { %s1635_s18 = smov %s1451_s10  ;;  %18 = sbr.rel (!%p16_p10) target bundleno = 5 (0x5), region = 92 }
 0x215   :  { %812 = vsyncpa [#allocation4], 1 }
 0x216   :  { %814 = vsyncpa [#allocation4 + $0x1], 1 }
 0x217   :  { %815 = vsyncpa [#allocation7], 1 }
 0x218   :  { %816 = vsyncpa [#allocation5], 1 }
 0x219   :  { %818 = vsyncpa [#allocation5 + $0x1], 1 }

</bundles_post_ra>
